<compile_context>
chip_gen: v7x
topology: tpu7x:2x2x1
jax: 0.10.0
libtpu: 0.0.40
codegen_flags: <defaults>
</compile_context>

<pallas_src>
import jax
import jax.numpy as jnp
from jax.experimental import pallas as pl
from jax.experimental.pallas import tpu as pltpu

# Conv hyper-parameters from the PyTorch module __init__.
KH, KW = 5, 9          # kernel size
SH, SW = 1, 9          # stride
DH, DW = 4, 5          # dilation
# padding = (0, 0)


def conv_kernel(x_ref, w_ref, b_ref, o_ref):
    """Dilated/strided conv, 1 in / 1 out channel, H on the lane axis.

    x_ref: (KW, Wt, H)   f32, VMEM  gathered input: x_ref[j, ow, h] =
                                    x[b, 0, h, ow*SW + j*DW]
    w_ref: (KH*KW,)      f32, SMEM  flattened weights, w_ref[i*KW + j]
    b_ref: (1,)          f32, SMEM
    o_ref: (Wt, H_out)   f32, VMEM  o_ref[ow, ho] = transposed conv output
    """
    wt, h_out = o_ref.shape
    x = x_ref[...]                                    # one dense load
    acc = jnp.full((wt, h_out), b_ref[0], jnp.float32)
    for i in range(KH):                               # 5 lane shifts (XLU)
        rows = x[:, :, i * DH:i * DH + h_out]         # (KW, Wt, H_out)
        for j in range(KW):                           # 45 dense VPU FMAs
            acc = acc + rows[j] * w_ref[i * KW + j]
    o_ref[...] = acc                                  # single lane-dense store


def _pick_w_tile(w_out, h, elem_bytes=4, budget_bytes=8 << 20):
    """Largest W_out tile whose gathered input block (KW, wt, H) stays under
    `budget_bytes` so double-buffering fits comfortably in scoped VMEM even on
    v7x.  wt must equal W_out or be a multiple of 8 ((8,128) BlockSpec rule)."""
    def block_bytes(wt):
        return KW * wt * h * elem_bytes
    if block_bytes(w_out) <= budget_bytes:
        return w_out
    best = w_out                                      # fallback: single block
    for wt in range(8, w_out, 8):
        if w_out % wt == 0 and block_bytes(wt) <= budget_bytes:
            best = wt
    return best


def conv_example(x, weight, bias):
    """x: (B, 1, H, W) NCHW.  weight: (1, 1, KH, KW).  bias: (1,).
    Returns (B, 1, H_out, W_out), matching the PyTorch conv."""
    B, c_in, H, W = x.shape
    assert c_in == 1
    H_out = (H - (DH * (KH - 1) + 1)) // SH + 1
    W_out = (W - (DW * (KW - 1) + 1)) // SW + 1
    assert H_out >= 1 and W_out >= 1, "input smaller than effective kernel"

    # ---- layout plumbing in the wrapper (XLA); no compute hoisted ---------
    # Put H on the lane (last) axis and pre-select, for every output column
    # `ow`, the KW dilated input columns it reads:
    #   x_g[b, j, ow, h] = x[b, 0, h, ow*SW + j*DW]
    # The W_out*KW selected columns are all distinct (gcd(SW, DW) arithmetic),
    # so this is a pure column permutation -- no data inflation.
    xs = x[:, 0].astype(jnp.float32)                                  # (B, H, W)
    cols = (jnp.arange(W_out) * SW)[:, None] + (jnp.arange(KW) * DW)[None, :]
    x_g = jnp.transpose(xs[:, :, cols], (0, 3, 2, 1))                 # (B, KW, W_out, H)

    w_flat = weight.reshape(-1).astype(jnp.float32)                   # (KH*KW,)
    b1 = bias.reshape(-1).astype(jnp.float32)                         # (1,)

    wt = _pick_w_tile(W_out, H)
    n_wt = W_out // wt

    out = pl.pallas_call(
        conv_kernel,
        out_shape=jax.ShapeDtypeStruct((B, W_out, H_out), jnp.float32),
        grid=(B, n_wt),
        in_specs=[
            # gathered input: one (KW, wt, H) block per (batch, W_out-tile)
            pl.BlockSpec((None, KW, wt, H), lambda b, w: (b, 0, w, 0)),
            # weights / bias: tiny, whole arrays in SMEM
            pl.BlockSpec(memory_space=pltpu.MemorySpace.SMEM),
            pl.BlockSpec(memory_space=pltpu.MemorySpace.SMEM),
        ],
        out_specs=pl.BlockSpec((None, wt, H_out), lambda b, w: (b, w, 0)),
        compiler_params=pltpu.CompilerParams(
            dimension_semantics=("parallel", "parallel")),
    )(x_g, w_flat, b1)

    # (B, W_out, H_out) -> (B, 1, H_out, W_out) NCHW
    return jnp.transpose(out, (0, 2, 1))[:, None, :, :]


if __name__ == "__main__":
    key = jax.random.PRNGKey(0)
    kx, kw, kb = jax.random.split(key, 3)

    # Effective kernel = (1 + 4*(5-1), 1 + 5*(9-1)) = (17, 41) => H>=17, W>=41.
    B, H, W = 2, 24, 59                       # -> output (2, 1, 8, 3)
    x = jax.random.normal(kx, (B, 1, H, W), dtype=jnp.float32)

    # Deterministic parameter init (PyTorch-default-style uniform bounds).
    fan_in = 1 * KH * KW
    bound = 1.0 / float(fan_in) ** 0.5
    weight = jax.random.uniform(kw, (1, 1, KH, KW), jnp.float32, -bound, bound)
    bias = jax.random.uniform(kb, (1,), jnp.float32, -bound, bound)

    out = jax.block_until_ready(conv_example(x, weight, bias))

    # Reference check against XLA's dilated conv.
    ref = jax.lax.conv_general_dilated(
        x, weight,
        window_strides=(SH, SW),
        padding="VALID",
        rhs_dilation=(DH, DW),
        dimension_numbers=("NCHW", "OIHW", "NCHW"),
        precision=jax.lax.Precision.HIGHEST,
    ) + bias.reshape(1, -1, 1, 1)

    assert out.shape == ref.shape, (out.shape, ref.shape)
    assert jnp.allclose(out, ref, atol=1e-4, rtol=1e-4), float(
        jnp.max(jnp.abs(out - ref)))
    print("KERNEL_OK")
</pallas_src>

<mosaic_0001>
module attributes {stable_mosaic.version = 11 : i64} {
  func.func @conv_kernel(%arg0: i32, %arg1: i32, %arg2: memref<1x9x3x24xf32, #tpu.memory_space<vmem>>, %arg3: memref<45xf32, #tpu.memory_space<smem>>, %arg4: memref<1xf32, #tpu.memory_space<smem>>, %arg5: memref<1x3x8xf32, #tpu.memory_space<vmem>>) attributes {dimension_semantics = [#tpu.dimension_semantics<parallel>, #tpu.dimension_semantics<parallel>], iteration_bounds = array<i64: 2, 1>, scalar_prefetch = 0 : i64, scratch_operands = 0 : i64, tpu.core_type = #tpu.core_type<tc>, window_params = [{transform_indices = @transform_0, window_bounds = array<i64: 1, 9, 3, 24>}, {transform_indices = @transform_1, window_bounds = array<i64: 45>}, {transform_indices = @transform_2, window_bounds = array<i64: 1>}, {transform_indices = @transform_3, window_bounds = array<i64: 1, 3, 8>}]} {
    %c0 = arith.constant 0 : index
    %c0_0 = arith.constant 0 : index
    %c0_1 = arith.constant 0 : index
    %c0_2 = arith.constant 0 : index
    %0 = vector.load %arg2[%c0, %c0_0, %c0_1, %c0_2] : memref<1x9x3x24xf32, #tpu.memory_space<vmem>>, vector<1x9x3x24xf32>
    %1 = vector.shape_cast %0 : vector<1x9x3x24xf32> to vector<9x3x24xf32>
    %c0_3 = arith.constant 0 : index
    %2 = memref.load %arg4[%c0_3] : memref<1xf32, #tpu.memory_space<smem>>
    %3 = vector.broadcast %2 : f32 to vector<3x8xf32>
    %4 = vector.extract_strided_slice %1 {offsets = [0, 0, 0], sizes = [9, 3, 8], strides = [1, 1, 1]} : vector<9x3x24xf32> to vector<9x3x8xf32>
    %5 = vector.extract_strided_slice %4 {offsets = [0, 0, 0], sizes = [1, 3, 8], strides = [1, 1, 1]} : vector<9x3x8xf32> to vector<1x3x8xf32>
    %6 = vector.shape_cast %5 : vector<1x3x8xf32> to vector<3x8xf32>
    %c0_4 = arith.constant 0 : index
    %7 = memref.load %arg3[%c0_4] : memref<45xf32, #tpu.memory_space<smem>>
    %8 = vector.broadcast %7 : f32 to vector<3x8xf32>
    %9 = arith.mulf %6, %8 : vector<3x8xf32>
    %10 = arith.addf %3, %9 : vector<3x8xf32>
    %11 = vector.extract_strided_slice %4 {offsets = [1, 0, 0], sizes = [1, 3, 8], strides = [1, 1, 1]} : vector<9x3x8xf32> to vector<1x3x8xf32>
    %12 = vector.shape_cast %11 : vector<1x3x8xf32> to vector<3x8xf32>
    %c1 = arith.constant 1 : index
    %13 = memref.load %arg3[%c1] : memref<45xf32, #tpu.memory_space<smem>>
    %14 = vector.broadcast %13 : f32 to vector<3x8xf32>
    %15 = arith.mulf %12, %14 : vector<3x8xf32>
    %16 = arith.addf %10, %15 : vector<3x8xf32>
    %17 = vector.extract_strided_slice %4 {offsets = [2, 0, 0], sizes = [1, 3, 8], strides = [1, 1, 1]} : vector<9x3x8xf32> to vector<1x3x8xf32>
    %18 = vector.shape_cast %17 : vector<1x3x8xf32> to vector<3x8xf32>
    %c2 = arith.constant 2 : index
    %19 = memref.load %arg3[%c2] : memref<45xf32, #tpu.memory_space<smem>>
    %20 = vector.broadcast %19 : f32 to vector<3x8xf32>
    %21 = arith.mulf %18, %20 : vector<3x8xf32>
    %22 = arith.addf %16, %21 : vector<3x8xf32>
    %23 = vector.extract_strided_slice %4 {offsets = [3, 0, 0], sizes = [1, 3, 8], strides = [1, 1, 1]} : vector<9x3x8xf32> to vector<1x3x8xf32>
    %24 = vector.shape_cast %23 : vector<1x3x8xf32> to vector<3x8xf32>
    %c3 = arith.constant 3 : index
    %25 = memref.load %arg3[%c3] : memref<45xf32, #tpu.memory_space<smem>>
    %26 = vector.broadcast %25 : f32 to vector<3x8xf32>
    %27 = arith.mulf %24, %26 : vector<3x8xf32>
    %28 = arith.addf %22, %27 : vector<3x8xf32>
    %29 = vector.extract_strided_slice %4 {offsets = [4, 0, 0], sizes = [1, 3, 8], strides = [1, 1, 1]} : vector<9x3x8xf32> to vector<1x3x8xf32>
    %30 = vector.shape_cast %29 : vector<1x3x8xf32> to vector<3x8xf32>
    %c4 = arith.constant 4 : index
    %31 = memref.load %arg3[%c4] : memref<45xf32, #tpu.memory_space<smem>>
    %32 = vector.broadcast %31 : f32 to vector<3x8xf32>
    %33 = arith.mulf %30, %32 : vector<3x8xf32>
    %34 = arith.addf %28, %33 : vector<3x8xf32>
    %35 = vector.extract_strided_slice %4 {offsets = [5, 0, 0], sizes = [1, 3, 8], strides = [1, 1, 1]} : vector<9x3x8xf32> to vector<1x3x8xf32>
    %36 = vector.shape_cast %35 : vector<1x3x8xf32> to vector<3x8xf32>
    %c5 = arith.constant 5 : index
    %37 = memref.load %arg3[%c5] : memref<45xf32, #tpu.memory_space<smem>>
    %38 = vector.broadcast %37 : f32 to vector<3x8xf32>
    %39 = arith.mulf %36, %38 : vector<3x8xf32>
    %40 = arith.addf %34, %39 : vector<3x8xf32>
    %41 = vector.extract_strided_slice %4 {offsets = [6, 0, 0], sizes = [1, 3, 8], strides = [1, 1, 1]} : vector<9x3x8xf32> to vector<1x3x8xf32>
    %42 = vector.shape_cast %41 : vector<1x3x8xf32> to vector<3x8xf32>
    %c6 = arith.constant 6 : index
    %43 = memref.load %arg3[%c6] : memref<45xf32, #tpu.memory_space<smem>>
    %44 = vector.broadcast %43 : f32 to vector<3x8xf32>
    %45 = arith.mulf %42, %44 : vector<3x8xf32>
    %46 = arith.addf %40, %45 : vector<3x8xf32>
    %47 = vector.extract_strided_slice %4 {offsets = [7, 0, 0], sizes = [1, 3, 8], strides = [1, 1, 1]} : vector<9x3x8xf32> to vector<1x3x8xf32>
    %48 = vector.shape_cast %47 : vector<1x3x8xf32> to vector<3x8xf32>
    %c7 = arith.constant 7 : index
    %49 = memref.load %arg3[%c7] : memref<45xf32, #tpu.memory_space<smem>>
    %50 = vector.broadcast %49 : f32 to vector<3x8xf32>
    %51 = arith.mulf %48, %50 : vector<3x8xf32>
    %52 = arith.addf %46, %51 : vector<3x8xf32>
    %53 = vector.extract_strided_slice %4 {offsets = [8, 0, 0], sizes = [1, 3, 8], strides = [1, 1, 1]} : vector<9x3x8xf32> to vector<1x3x8xf32>
    %54 = vector.shape_cast %53 : vector<1x3x8xf32> to vector<3x8xf32>
    %c8 = arith.constant 8 : index
    %55 = memref.load %arg3[%c8] : memref<45xf32, #tpu.memory_space<smem>>
    %56 = vector.broadcast %55 : f32 to vector<3x8xf32>
    %57 = arith.mulf %54, %56 : vector<3x8xf32>
    %58 = arith.addf %52, %57 : vector<3x8xf32>
    %59 = vector.extract_strided_slice %1 {offsets = [0, 0, 4], sizes = [9, 3, 8], strides = [1, 1, 1]} : vector<9x3x24xf32> to vector<9x3x8xf32>
    %60 = vector.extract_strided_slice %59 {offsets = [0, 0, 0], sizes = [1, 3, 8], strides = [1, 1, 1]} : vector<9x3x8xf32> to vector<1x3x8xf32>
    %61 = vector.shape_cast %60 : vector<1x3x8xf32> to vector<3x8xf32>
    %c9 = arith.constant 9 : index
    %62 = memref.load %arg3[%c9] : memref<45xf32, #tpu.memory_space<smem>>
    %63 = vector.broadcast %62 : f32 to vector<3x8xf32>
    %64 = arith.mulf %61, %63 : vector<3x8xf32>
    %65 = arith.addf %58, %64 : vector<3x8xf32>
    %66 = vector.extract_strided_slice %59 {offsets = [1, 0, 0], sizes = [1, 3, 8], strides = [1, 1, 1]} : vector<9x3x8xf32> to vector<1x3x8xf32>
    %67 = vector.shape_cast %66 : vector<1x3x8xf32> to vector<3x8xf32>
    %c10 = arith.constant 10 : index
    %68 = memref.load %arg3[%c10] : memref<45xf32, #tpu.memory_space<smem>>
    %69 = vector.broadcast %68 : f32 to vector<3x8xf32>
    %70 = arith.mulf %67, %69 : vector<3x8xf32>
    %71 = arith.addf %65, %70 : vector<3x8xf32>
    %72 = vector.extract_strided_slice %59 {offsets = [2, 0, 0], sizes = [1, 3, 8], strides = [1, 1, 1]} : vector<9x3x8xf32> to vector<1x3x8xf32>
    %73 = vector.shape_cast %72 : vector<1x3x8xf32> to vector<3x8xf32>
    %c11 = arith.constant 11 : index
    %74 = memref.load %arg3[%c11] : memref<45xf32, #tpu.memory_space<smem>>
    %75 = vector.broadcast %74 : f32 to vector<3x8xf32>
    %76 = arith.mulf %73, %75 : vector<3x8xf32>
    %77 = arith.addf %71, %76 : vector<3x8xf32>
    %78 = vector.extract_strided_slice %59 {offsets = [3, 0, 0], sizes = [1, 3, 8], strides = [1, 1, 1]} : vector<9x3x8xf32> to vector<1x3x8xf32>
    %79 = vector.shape_cast %78 : vector<1x3x8xf32> to vector<3x8xf32>
    %c12 = arith.constant 12 : index
    %80 = memref.load %arg3[%c12] : memref<45xf32, #tpu.memory_space<smem>>
    %81 = vector.broadcast %80 : f32 to vector<3x8xf32>
    %82 = arith.mulf %79, %81 : vector<3x8xf32>
    %83 = arith.addf %77, %82 : vector<3x8xf32>
    %84 = vector.extract_strided_slice %59 {offsets = [4, 0, 0], sizes = [1, 3, 8], strides = [1, 1, 1]} : vector<9x3x8xf32> to vector<1x3x8xf32>
    %85 = vector.shape_cast %84 : vector<1x3x8xf32> to vector<3x8xf32>
    %c13 = arith.constant 13 : index
    %86 = memref.load %arg3[%c13] : memref<45xf32, #tpu.memory_space<smem>>
    %87 = vector.broadcast %86 : f32 to vector<3x8xf32>
    %88 = arith.mulf %85, %87 : vector<3x8xf32>
    %89 = arith.addf %83, %88 : vector<3x8xf32>
    %90 = vector.extract_strided_slice %59 {offsets = [5, 0, 0], sizes = [1, 3, 8], strides = [1, 1, 1]} : vector<9x3x8xf32> to vector<1x3x8xf32>
    %91 = vector.shape_cast %90 : vector<1x3x8xf32> to vector<3x8xf32>
    %c14 = arith.constant 14 : index
    %92 = memref.load %arg3[%c14] : memref<45xf32, #tpu.memory_space<smem>>
    %93 = vector.broadcast %92 : f32 to vector<3x8xf32>
    %94 = arith.mulf %91, %93 : vector<3x8xf32>
    %95 = arith.addf %89, %94 : vector<3x8xf32>
    %96 = vector.extract_strided_slice %59 {offsets = [6, 0, 0], sizes = [1, 3, 8], strides = [1, 1, 1]} : vector<9x3x8xf32> to vector<1x3x8xf32>
    %97 = vector.shape_cast %96 : vector<1x3x8xf32> to vector<3x8xf32>
    %c15 = arith.constant 15 : index
    %98 = memref.load %arg3[%c15] : memref<45xf32, #tpu.memory_space<smem>>
    %99 = vector.broadcast %98 : f32 to vector<3x8xf32>
    %100 = arith.mulf %97, %99 : vector<3x8xf32>
    %101 = arith.addf %95, %100 : vector<3x8xf32>
    %102 = vector.extract_strided_slice %59 {offsets = [7, 0, 0], sizes = [1, 3, 8], strides = [1, 1, 1]} : vector<9x3x8xf32> to vector<1x3x8xf32>
    %103 = vector.shape_cast %102 : vector<1x3x8xf32> to vector<3x8xf32>
    %c16 = arith.constant 16 : index
    %104 = memref.load %arg3[%c16] : memref<45xf32, #tpu.memory_space<smem>>
    %105 = vector.broadcast %104 : f32 to vector<3x8xf32>
    %106 = arith.mulf %103, %105 : vector<3x8xf32>
    %107 = arith.addf %101, %106 : vector<3x8xf32>
    %108 = vector.extract_strided_slice %59 {offsets = [8, 0, 0], sizes = [1, 3, 8], strides = [1, 1, 1]} : vector<9x3x8xf32> to vector<1x3x8xf32>
    %109 = vector.shape_cast %108 : vector<1x3x8xf32> to vector<3x8xf32>
    %c17 = arith.constant 17 : index
    %110 = memref.load %arg3[%c17] : memref<45xf32, #tpu.memory_space<smem>>
    %111 = vector.broadcast %110 : f32 to vector<3x8xf32>
    %112 = arith.mulf %109, %111 : vector<3x8xf32>
    %113 = arith.addf %107, %112 : vector<3x8xf32>
    %114 = vector.extract_strided_slice %1 {offsets = [0, 0, 8], sizes = [9, 3, 8], strides = [1, 1, 1]} : vector<9x3x24xf32> to vector<9x3x8xf32>
    %115 = vector.extract_strided_slice %114 {offsets = [0, 0, 0], sizes = [1, 3, 8], strides = [1, 1, 1]} : vector<9x3x8xf32> to vector<1x3x8xf32>
    %116 = vector.shape_cast %115 : vector<1x3x8xf32> to vector<3x8xf32>
    %c18 = arith.constant 18 : index
    %117 = memref.load %arg3[%c18] : memref<45xf32, #tpu.memory_space<smem>>
    %118 = vector.broadcast %117 : f32 to vector<3x8xf32>
    %119 = arith.mulf %116, %118 : vector<3x8xf32>
    %120 = arith.addf %113, %119 : vector<3x8xf32>
    %121 = vector.extract_strided_slice %114 {offsets = [1, 0, 0], sizes = [1, 3, 8], strides = [1, 1, 1]} : vector<9x3x8xf32> to vector<1x3x8xf32>
    %122 = vector.shape_cast %121 : vector<1x3x8xf32> to vector<3x8xf32>
    %c19 = arith.constant 19 : index
    %123 = memref.load %arg3[%c19] : memref<45xf32, #tpu.memory_space<smem>>
    %124 = vector.broadcast %123 : f32 to vector<3x8xf32>
    %125 = arith.mulf %122, %124 : vector<3x8xf32>
    %126 = arith.addf %120, %125 : vector<3x8xf32>
    %127 = vector.extract_strided_slice %114 {offsets = [2, 0, 0], sizes = [1, 3, 8], strides = [1, 1, 1]} : vector<9x3x8xf32> to vector<1x3x8xf32>
    %128 = vector.shape_cast %127 : vector<1x3x8xf32> to vector<3x8xf32>
    %c20 = arith.constant 20 : index
    %129 = memref.load %arg3[%c20] : memref<45xf32, #tpu.memory_space<smem>>
    %130 = vector.broadcast %129 : f32 to vector<3x8xf32>
    %131 = arith.mulf %128, %130 : vector<3x8xf32>
    %132 = arith.addf %126, %131 : vector<3x8xf32>
    %133 = vector.extract_strided_slice %114 {offsets = [3, 0, 0], sizes = [1, 3, 8], strides = [1, 1, 1]} : vector<9x3x8xf32> to vector<1x3x8xf32>
    %134 = vector.shape_cast %133 : vector<1x3x8xf32> to vector<3x8xf32>
    %c21 = arith.constant 21 : index
    %135 = memref.load %arg3[%c21] : memref<45xf32, #tpu.memory_space<smem>>
    %136 = vector.broadcast %135 : f32 to vector<3x8xf32>
    %137 = arith.mulf %134, %136 : vector<3x8xf32>
    %138 = arith.addf %132, %137 : vector<3x8xf32>
    %139 = vector.extract_strided_slice %114 {offsets = [4, 0, 0], sizes = [1, 3, 8], strides = [1, 1, 1]} : vector<9x3x8xf32> to vector<1x3x8xf32>
    %140 = vector.shape_cast %139 : vector<1x3x8xf32> to vector<3x8xf32>
    %c22 = arith.constant 22 : index
    %141 = memref.load %arg3[%c22] : memref<45xf32, #tpu.memory_space<smem>>
    %142 = vector.broadcast %141 : f32 to vector<3x8xf32>
    %143 = arith.mulf %140, %142 : vector<3x8xf32>
    %144 = arith.addf %138, %143 : vector<3x8xf32>
    %145 = vector.extract_strided_slice %114 {offsets = [5, 0, 0], sizes = [1, 3, 8], strides = [1, 1, 1]} : vector<9x3x8xf32> to vector<1x3x8xf32>
    %146 = vector.shape_cast %145 : vector<1x3x8xf32> to vector<3x8xf32>
    %c23 = arith.constant 23 : index
    %147 = memref.load %arg3[%c23] : memref<45xf32, #tpu.memory_space<smem>>
    %148 = vector.broadcast %147 : f32 to vector<3x8xf32>
    %149 = arith.mulf %146, %148 : vector<3x8xf32>
    %150 = arith.addf %144, %149 : vector<3x8xf32>
    %151 = vector.extract_strided_slice %114 {offsets = [6, 0, 0], sizes = [1, 3, 8], strides = [1, 1, 1]} : vector<9x3x8xf32> to vector<1x3x8xf32>
    %152 = vector.shape_cast %151 : vector<1x3x8xf32> to vector<3x8xf32>
    %c24 = arith.constant 24 : index
    %153 = memref.load %arg3[%c24] : memref<45xf32, #tpu.memory_space<smem>>
    %154 = vector.broadcast %153 : f32 to vector<3x8xf32>
    %155 = arith.mulf %152, %154 : vector<3x8xf32>
    %156 = arith.addf %150, %155 : vector<3x8xf32>
    %157 = vector.extract_strided_slice %114 {offsets = [7, 0, 0], sizes = [1, 3, 8], strides = [1, 1, 1]} : vector<9x3x8xf32> to vector<1x3x8xf32>
    %158 = vector.shape_cast %157 : vector<1x3x8xf32> to vector<3x8xf32>
    %c25 = arith.constant 25 : index
    %159 = memref.load %arg3[%c25] : memref<45xf32, #tpu.memory_space<smem>>
    %160 = vector.broadcast %159 : f32 to vector<3x8xf32>
    %161 = arith.mulf %158, %160 : vector<3x8xf32>
    %162 = arith.addf %156, %161 : vector<3x8xf32>
    %163 = vector.extract_strided_slice %114 {offsets = [8, 0, 0], sizes = [1, 3, 8], strides = [1, 1, 1]} : vector<9x3x8xf32> to vector<1x3x8xf32>
    %164 = vector.shape_cast %163 : vector<1x3x8xf32> to vector<3x8xf32>
    %c26 = arith.constant 26 : index
    %165 = memref.load %arg3[%c26] : memref<45xf32, #tpu.memory_space<smem>>
    %166 = vector.broadcast %165 : f32 to vector<3x8xf32>
    %167 = arith.mulf %164, %166 : vector<3x8xf32>
    %168 = arith.addf %162, %167 : vector<3x8xf32>
    %169 = vector.extract_strided_slice %1 {offsets = [0, 0, 12], sizes = [9, 3, 8], strides = [1, 1, 1]} : vector<9x3x24xf32> to vector<9x3x8xf32>
    %170 = vector.extract_strided_slice %169 {offsets = [0, 0, 0], sizes = [1, 3, 8], strides = [1, 1, 1]} : vector<9x3x8xf32> to vector<1x3x8xf32>
    %171 = vector.shape_cast %170 : vector<1x3x8xf32> to vector<3x8xf32>
    %c27 = arith.constant 27 : index
    %172 = memref.load %arg3[%c27] : memref<45xf32, #tpu.memory_space<smem>>
    %173 = vector.broadcast %172 : f32 to vector<3x8xf32>
    %174 = arith.mulf %171, %173 : vector<3x8xf32>
    %175 = arith.addf %168, %174 : vector<3x8xf32>
    %176 = vector.extract_strided_slice %169 {offsets = [1, 0, 0], sizes = [1, 3, 8], strides = [1, 1, 1]} : vector<9x3x8xf32> to vector<1x3x8xf32>
    %177 = vector.shape_cast %176 : vector<1x3x8xf32> to vector<3x8xf32>
    %c28 = arith.constant 28 : index
    %178 = memref.load %arg3[%c28] : memref<45xf32, #tpu.memory_space<smem>>
    %179 = vector.broadcast %178 : f32 to vector<3x8xf32>
    %180 = arith.mulf %177, %179 : vector<3x8xf32>
    %181 = arith.addf %175, %180 : vector<3x8xf32>
    %182 = vector.extract_strided_slice %169 {offsets = [2, 0, 0], sizes = [1, 3, 8], strides = [1, 1, 1]} : vector<9x3x8xf32> to vector<1x3x8xf32>
    %183 = vector.shape_cast %182 : vector<1x3x8xf32> to vector<3x8xf32>
    %c29 = arith.constant 29 : index
    %184 = memref.load %arg3[%c29] : memref<45xf32, #tpu.memory_space<smem>>
    %185 = vector.broadcast %184 : f32 to vector<3x8xf32>
    %186 = arith.mulf %183, %185 : vector<3x8xf32>
    %187 = arith.addf %181, %186 : vector<3x8xf32>
    %188 = vector.extract_strided_slice %169 {offsets = [3, 0, 0], sizes = [1, 3, 8], strides = [1, 1, 1]} : vector<9x3x8xf32> to vector<1x3x8xf32>
    %189 = vector.shape_cast %188 : vector<1x3x8xf32> to vector<3x8xf32>
    %c30 = arith.constant 30 : index
    %190 = memref.load %arg3[%c30] : memref<45xf32, #tpu.memory_space<smem>>
    %191 = vector.broadcast %190 : f32 to vector<3x8xf32>
    %192 = arith.mulf %189, %191 : vector<3x8xf32>
    %193 = arith.addf %187, %192 : vector<3x8xf32>
    %194 = vector.extract_strided_slice %169 {offsets = [4, 0, 0], sizes = [1, 3, 8], strides = [1, 1, 1]} : vector<9x3x8xf32> to vector<1x3x8xf32>
    %195 = vector.shape_cast %194 : vector<1x3x8xf32> to vector<3x8xf32>
    %c31 = arith.constant 31 : index
    %196 = memref.load %arg3[%c31] : memref<45xf32, #tpu.memory_space<smem>>
    %197 = vector.broadcast %196 : f32 to vector<3x8xf32>
    %198 = arith.mulf %195, %197 : vector<3x8xf32>
    %199 = arith.addf %193, %198 : vector<3x8xf32>
    %200 = vector.extract_strided_slice %169 {offsets = [5, 0, 0], sizes = [1, 3, 8], strides = [1, 1, 1]} : vector<9x3x8xf32> to vector<1x3x8xf32>
    %201 = vector.shape_cast %200 : vector<1x3x8xf32> to vector<3x8xf32>
    %c32 = arith.constant 32 : index
    %202 = memref.load %arg3[%c32] : memref<45xf32, #tpu.memory_space<smem>>
    %203 = vector.broadcast %202 : f32 to vector<3x8xf32>
    %204 = arith.mulf %201, %203 : vector<3x8xf32>
    %205 = arith.addf %199, %204 : vector<3x8xf32>
    %206 = vector.extract_strided_slice %169 {offsets = [6, 0, 0], sizes = [1, 3, 8], strides = [1, 1, 1]} : vector<9x3x8xf32> to vector<1x3x8xf32>
    %207 = vector.shape_cast %206 : vector<1x3x8xf32> to vector<3x8xf32>
    %c33 = arith.constant 33 : index
    %208 = memref.load %arg3[%c33] : memref<45xf32, #tpu.memory_space<smem>>
    %209 = vector.broadcast %208 : f32 to vector<3x8xf32>
    %210 = arith.mulf %207, %209 : vector<3x8xf32>
    %211 = arith.addf %205, %210 : vector<3x8xf32>
    %212 = vector.extract_strided_slice %169 {offsets = [7, 0, 0], sizes = [1, 3, 8], strides = [1, 1, 1]} : vector<9x3x8xf32> to vector<1x3x8xf32>
    %213 = vector.shape_cast %212 : vector<1x3x8xf32> to vector<3x8xf32>
    %c34 = arith.constant 34 : index
    %214 = memref.load %arg3[%c34] : memref<45xf32, #tpu.memory_space<smem>>
    %215 = vector.broadcast %214 : f32 to vector<3x8xf32>
    %216 = arith.mulf %213, %215 : vector<3x8xf32>
    %217 = arith.addf %211, %216 : vector<3x8xf32>
    %218 = vector.extract_strided_slice %169 {offsets = [8, 0, 0], sizes = [1, 3, 8], strides = [1, 1, 1]} : vector<9x3x8xf32> to vector<1x3x8xf32>
    %219 = vector.shape_cast %218 : vector<1x3x8xf32> to vector<3x8xf32>
    %c35 = arith.constant 35 : index
    %220 = memref.load %arg3[%c35] : memref<45xf32, #tpu.memory_space<smem>>
    %221 = vector.broadcast %220 : f32 to vector<3x8xf32>
    %222 = arith.mulf %219, %221 : vector<3x8xf32>
    %223 = arith.addf %217, %222 : vector<3x8xf32>
    %224 = vector.extract_strided_slice %1 {offsets = [0, 0, 16], sizes = [9, 3, 8], strides = [1, 1, 1]} : vector<9x3x24xf32> to vector<9x3x8xf32>
    %225 = vector.extract_strided_slice %224 {offsets = [0, 0, 0], sizes = [1, 3, 8], strides = [1, 1, 1]} : vector<9x3x8xf32> to vector<1x3x8xf32>
    %226 = vector.shape_cast %225 : vector<1x3x8xf32> to vector<3x8xf32>
    %c36 = arith.constant 36 : index
    %227 = memref.load %arg3[%c36] : memref<45xf32, #tpu.memory_space<smem>>
    %228 = vector.broadcast %227 : f32 to vector<3x8xf32>
    %229 = arith.mulf %226, %228 : vector<3x8xf32>
    %230 = arith.addf %223, %229 : vector<3x8xf32>
    %231 = vector.extract_strided_slice %224 {offsets = [1, 0, 0], sizes = [1, 3, 8], strides = [1, 1, 1]} : vector<9x3x8xf32> to vector<1x3x8xf32>
    %232 = vector.shape_cast %231 : vector<1x3x8xf32> to vector<3x8xf32>
    %c37 = arith.constant 37 : index
    %233 = memref.load %arg3[%c37] : memref<45xf32, #tpu.memory_space<smem>>
    %234 = vector.broadcast %233 : f32 to vector<3x8xf32>
    %235 = arith.mulf %232, %234 : vector<3x8xf32>
    %236 = arith.addf %230, %235 : vector<3x8xf32>
    %237 = vector.extract_strided_slice %224 {offsets = [2, 0, 0], sizes = [1, 3, 8], strides = [1, 1, 1]} : vector<9x3x8xf32> to vector<1x3x8xf32>
    %238 = vector.shape_cast %237 : vector<1x3x8xf32> to vector<3x8xf32>
    %c38 = arith.constant 38 : index
    %239 = memref.load %arg3[%c38] : memref<45xf32, #tpu.memory_space<smem>>
    %240 = vector.broadcast %239 : f32 to vector<3x8xf32>
    %241 = arith.mulf %238, %240 : vector<3x8xf32>
    %242 = arith.addf %236, %241 : vector<3x8xf32>
    %243 = vector.extract_strided_slice %224 {offsets = [3, 0, 0], sizes = [1, 3, 8], strides = [1, 1, 1]} : vector<9x3x8xf32> to vector<1x3x8xf32>
    %244 = vector.shape_cast %243 : vector<1x3x8xf32> to vector<3x8xf32>
    %c39 = arith.constant 39 : index
    %245 = memref.load %arg3[%c39] : memref<45xf32, #tpu.memory_space<smem>>
    %246 = vector.broadcast %245 : f32 to vector<3x8xf32>
    %247 = arith.mulf %244, %246 : vector<3x8xf32>
    %248 = arith.addf %242, %247 : vector<3x8xf32>
    %249 = vector.extract_strided_slice %224 {offsets = [4, 0, 0], sizes = [1, 3, 8], strides = [1, 1, 1]} : vector<9x3x8xf32> to vector<1x3x8xf32>
    %250 = vector.shape_cast %249 : vector<1x3x8xf32> to vector<3x8xf32>
    %c40 = arith.constant 40 : index
    %251 = memref.load %arg3[%c40] : memref<45xf32, #tpu.memory_space<smem>>
    %252 = vector.broadcast %251 : f32 to vector<3x8xf32>
    %253 = arith.mulf %250, %252 : vector<3x8xf32>
    %254 = arith.addf %248, %253 : vector<3x8xf32>
    %255 = vector.extract_strided_slice %224 {offsets = [5, 0, 0], sizes = [1, 3, 8], strides = [1, 1, 1]} : vector<9x3x8xf32> to vector<1x3x8xf32>
    %256 = vector.shape_cast %255 : vector<1x3x8xf32> to vector<3x8xf32>
    %c41 = arith.constant 41 : index
    %257 = memref.load %arg3[%c41] : memref<45xf32, #tpu.memory_space<smem>>
    %258 = vector.broadcast %257 : f32 to vector<3x8xf32>
    %259 = arith.mulf %256, %258 : vector<3x8xf32>
    %260 = arith.addf %254, %259 : vector<3x8xf32>
    %261 = vector.extract_strided_slice %224 {offsets = [6, 0, 0], sizes = [1, 3, 8], strides = [1, 1, 1]} : vector<9x3x8xf32> to vector<1x3x8xf32>
    %262 = vector.shape_cast %261 : vector<1x3x8xf32> to vector<3x8xf32>
    %c42 = arith.constant 42 : index
    %263 = memref.load %arg3[%c42] : memref<45xf32, #tpu.memory_space<smem>>
    %264 = vector.broadcast %263 : f32 to vector<3x8xf32>
    %265 = arith.mulf %262, %264 : vector<3x8xf32>
    %266 = arith.addf %260, %265 : vector<3x8xf32>
    %267 = vector.extract_strided_slice %224 {offsets = [7, 0, 0], sizes = [1, 3, 8], strides = [1, 1, 1]} : vector<9x3x8xf32> to vector<1x3x8xf32>
    %268 = vector.shape_cast %267 : vector<1x3x8xf32> to vector<3x8xf32>
    %c43 = arith.constant 43 : index
    %269 = memref.load %arg3[%c43] : memref<45xf32, #tpu.memory_space<smem>>
    %270 = vector.broadcast %269 : f32 to vector<3x8xf32>
    %271 = arith.mulf %268, %270 : vector<3x8xf32>
    %272 = arith.addf %266, %271 : vector<3x8xf32>
    %273 = vector.extract_strided_slice %224 {offsets = [8, 0, 0], sizes = [1, 3, 8], strides = [1, 1, 1]} : vector<9x3x8xf32> to vector<1x3x8xf32>
    %274 = vector.shape_cast %273 : vector<1x3x8xf32> to vector<3x8xf32>
    %c44 = arith.constant 44 : index
    %275 = memref.load %arg3[%c44] : memref<45xf32, #tpu.memory_space<smem>>
    %276 = vector.broadcast %275 : f32 to vector<3x8xf32>
    %277 = arith.mulf %274, %276 : vector<3x8xf32>
    %278 = arith.addf %272, %277 : vector<3x8xf32>
    %c0_5 = arith.constant 0 : index
    %c0_6 = arith.constant 0 : index
    %c0_7 = arith.constant 0 : index
    %279 = vector.load %arg5[%c0_5, %c0_6, %c0_7] : memref<1x3x8xf32, #tpu.memory_space<vmem>>, vector<1x3x8xf32>
    %280 = vector.shape_cast %279 : vector<1x3x8xf32> to vector<3x8xf32>
    %281 = vector.shape_cast %278 : vector<3x8xf32> to vector<1x3x8xf32>
    tpu.vector_store %arg5[%c0_5, %c0_6, %c0_7], %281 {strides = array<i32>} : memref<1x3x8xf32, #tpu.memory_space<vmem>>, vector<1x3x8xf32>,
    return
  }
  func.func @transform_0(%arg0: i32, %arg1: i32) -> (i32, i32, i32, i32) {
    %c0_i32 = arith.constant 0 : i32
    %c0_i32_0 = arith.constant 0 : i32
    %c0_i32_1 = arith.constant 0 : i32
    return %arg0, %c0_i32, %arg1, %c0_i32_0 : i32, i32, i32, i32
  }
  func.func @transform_1(%arg0: i32, %arg1: i32) -> i32 {
    %c0_i32 = arith.constant 0 : i32
    %c0_i32_0 = arith.constant 0 : i32
    return %c0_i32 : i32
  }
  func.func @transform_2(%arg0: i32, %arg1: i32) -> i32 {
    %c0_i32 = arith.constant 0 : i32
    %c0_i32_0 = arith.constant 0 : i32
    return %c0_i32 : i32
  }
  func.func @transform_3(%arg0: i32, %arg1: i32) -> (i32, i32, i32) {
    %c0_i32 = arith.constant 0 : i32
    %c0_i32_0 = arith.constant 0 : i32
    return %arg0, %arg1, %c0_i32 : i32, i32, i32
  }
}

</mosaic_0001>

<bundles_post_ra>
// kernel: tpu_custom_call.1
= control target key start
LH: loop header
LB: loop body
LE: loop exit
PB: predicated region body
PF: predicated region fallthrough
CT: control target
= control target key end

     0   :  { %s1038_s0 = inlined_call_operand.vmem [shape: f32[2,9,3,24], index: 0, kind: input, shape index: {}]   ;;  %s1039_s1 = inlined_call_operand.vmem [shape: f32[45], index: 1, kind: input, shape index: {}]   ;;  %s1040_s2 = inlined_call_operand.<no memory space> [shape: f32[1], index: 2, kind: input, shape index: {}]   ;;  %s1041_s3 = inlined_call_operand.vmem [shape: f32[2,3,8], index: 3, kind: output, shape index: {}]  }
   0x1   :  { %8 = sst [smem:[#allocation2]] %s1040_s2 }
   0x2   :  { %9 = vsyncpa [#allocation4], 0  ;;  %s808_s14 = smov 0   ;;  %s810_s15 = smov 0  }
   0x3   :  { %s812_s16 = smov 0  }
   0x4 LB: > { %s642_s2 = sadd.s32 4294967295, %s778_s16   ;;  %s27_s17 = sadd.s32 1, %s774_s15  ;;  %s778_s16 = sphi %s812_s16, %s15_s16   ;;  %s774_s15 = sphi %s810_s15, %s1045_s15   ;;  %s770_s14 = sphi %s808_s14, %s1044_s14  }
   0x5   : > { %p29_p0 = scmp.ge.s32.totalorder %s27_s17, 2  ;;  %p644_p1 = scmp.ge.s32.totalorder %s778_s16, 1 }
   0x6   : > { %p130_p2 = scmp.lt.s32.totalorder %s778_s16, 3  ;;  %p833_p4 = scmp.eq.s32.totalorder %s642_s2, 0 }
   0x7   : > { %s1047_s17 = smov (%p29_p0, %s27_s17), 0  ;;  %s143_s22 = sshll.u32 %s1039_s1, 4  ;;  %s144_s22 = int_to_ptr.vmem [resolvable:$true] %s143_s22 }
   0x8   : > { %p829_p3 = pnand %p644_p1, %p130_p2  ;;  %s737_s23 = scalar_lea.vmem %s144_s22, 16 }
   0x9   : > { %p738_p7 = scmp.ne.s32.totalorder %s144_s22, %s737_s23  ;;  %p745_p11 = scmp.lt.s32.totalorder %s144_s22, %s144_s22 }
   0xa   : > { %p702_p5 = pneg %p829_p3  ;;  %p746_p12 = scmp.lt.s32.totalorder %s737_s23, %s737_s23 }
   0xc   : > { %p703_p6 = pnand %p833_p4, %p702_p5  ;;  %p747_p13 = por %p746_p12, %p745_p11 }
   0xe   : > { %p739_p8 = pneg %p703_p6 }
  0x10   : > { %p740_p9 = pnand %p739_p8, %p738_p7 }
  0x12   : > { %p741_p10 = pneg %p740_p9 }
  0x14   : > { %p748_p0 = pnand %p747_p13, %p741_p10 }
  0x16   : > { %751 = shalt.err (!%p748_p0)
}
  0x17   : > { %s780_s24 = smov [#allocation3]   ;;  %170 = sbr.rel (%p829_p3) target bundleno = 232 (0xe8), region = 32 }
  0x18   : > { %705 = dma.vmem_to_smem (!%p703_p6), %s144_s22, 16, %s780_s24, [#allocation4]  }
  0x1e   : > { %765 = dma.done.wait (%p833_p4), [#allocation4], 16  }
  0x1f   : > { %767 = vsyncadd (%p833_p4), [#allocation4], 4294967280 }
  0x20   : > { %176 = sfence }
  0x21   : > { %p200_p1 = scmp.lt.s32.totalorder %s770_s14, 1  ;;  %s659_s25 = sld [smem:[#allocation3 + $0x9]]  ;;  %vm550_vm0 = vcmask 59392  }
  0x22   : > { %s661_s26 = sld [smem:[#allocation3 + $0xb]]  ;;  %s660_s27 = sld [smem:[#allocation3 + $0xa]] }
  0x23   : > { %s1049_s14 = smov (!%p200_p1, %s770_s14), 1  ;;  %s662_s28 = sld [smem:[#allocation3 + $0xc]] }
  0x24   : > { %s697_s29 = smul.u32 36, %s1049_s14  ;;  %s663_s30 = sld [smem:[#allocation3 + $0xd]] }
  0x25   : > { %s664_s4 = sld [smem:[#allocation3 + $0xe]]  ;;  %s855_s5 = sld [smem:[#allocation3 + $0xf]] }
  0x26   : > { %s860_s8 = scalar_lea.vmem %s1038_s0, %s697_s29  ;;  %s862_s9 = sld [smem:[#allocation3 + $0x10]] }
  0x27   : > { %v263_v0 = vstv %s659_s25  ;;  %v865_v1 = vld [vmem:[%s860_s8] sm:$0x7]  ;;  %v868_v2 = vld [vmem:[%s860_s8 + $0x8] sm:$0x7]  ;;  %v871_v4 = vld [vmem:[%s860_s8 + $0x4] sm:$0x7] }
  0x28   : > { %v279_v3 = vstv %s661_s26  ;;  %v264_v5 = vmul.f32 %v263_v0, %v865_v1  ;;  %v876_v7 = vld [vmem:[%s860_s8 + $0xc] sm:$0x7]  ;;  %v271_v8 = vstv %s660_s27  ;;  %s781_s10 = smov 124   ;;  %v883_v12 = vld [vmem:[%s860_s8 + $0x10] sm:$0x7]  ;;  %s667_s11 = sld [smem:[#allocation3 + $0x11]] }
  0x29   : > { %v280_v6 = vmul.f32 %v279_v3, %v868_v2  ;;  %v287_v9 = vstv %s662_s28  ;;  %v272_v10 = vmul.f32 %v271_v8, %v871_v4  ;;  %v886_v14 = vld [vmem:[%s860_s8 + $0x14] sm:$0x7]  ;;  %s668_s12 = sld [smem:[#allocation3 + $0x12]]  ;;  %v893_v18 = vld [vmem:[%s860_s8 + $0x18] sm:$0x7]  ;;  %s669_s13 = sld [smem:[#allocation3 + $0x13]] }
  0x2a   : > { %266 = vrot.lane.b32.xlu0 %v264_v5, %s781_s10  ;;  %v288_v11 = vmul.f32 %v287_v9, %v876_v7  ;;  %v295_v13 = vstv %s663_s30  ;;  %v897_v20 = vld [vmem:[%s860_s8 + $0x1c] sm:$0x7]  ;;  %s670_s2 = sld [smem:[#allocation3 + $0x14]]  ;;  %v905_v24 = vld [vmem:[%s860_s8 + $0x20] sm:$0x7]  ;;  %s671_s18 = sld [smem:[#allocation3 + $0x15]] }
  0x2b   : > { %282 = vrot.lane.b32.xlu1 %v280_v6, %s781_s10  ;;  %v303_v15 = vstv %s664_s4  ;;  %v296_v16 = vmul.f32 %v295_v13, %v883_v12  ;;  %v311_v19 = vstv %s855_s5  ;;  %s672_s19 = sld [smem:[#allocation3 + $0x16]]  ;;  %s911_s20 = sld [smem:[#allocation3 + $0x17]] }
  0x2c   : > { %v304_v17 = vmul.f32 %v303_v15, %v886_v14  ;;  %v319_v21 = vstv %s862_s9  ;;  %v312_v22 = vmul.f32 %v311_v19, %v893_v18  ;;  %s913_s21 = sld [smem:[#allocation3 + $0x18]]  ;;  %s915_s22 = sld [smem:[#allocation3 + $0x19]] }
  0x2d   : > { %v320_v23 = vmul.f32 %v319_v21, %v897_v20  ;;  %s917_s23 = sld [smem:[#allocation2]]  ;;  %s782_s25 = smov 120  }
  0x2e   : > { %274 = vrot.lane.b32.xlu0 %v272_v10, %s781_s10  ;;  %v327_v25 = vstv %s667_s11  ;;  %s226_s24 = sld [smem:[#allocation3]]  ;;  %s651_s26 = sld [smem:[#allocation3 + $0x1]] }
  0x2f   : > { %290 = vrot.lane.b32.xlu1 %v288_v11, %s781_s10  ;;  %v335_v26 = vstv %s668_s12  ;;  %v328_v27 = vmul.f32 %v327_v25, %v905_v24  ;;  %v343_v29 = vstv %s669_s13  ;;  %s923_s27 = sld [smem:[#allocation3 + $0x2]]  ;;  %s927_s29 = sld [smem:[#allocation3 + $0x3]] }
  0x30   : > { %v336_v28 = vmul.f32 %v335_v26, %v865_v1  ;;  %v351_v30 = vstv %s670_s2  ;;  %v344_v31 = vmul.f32 %v343_v29, %v871_v4  ;;  %v359_v33 = vstv %s671_s18  ;;  %s925_s28 = sld [smem:[#allocation3 + $0x1a]]  ;;  %s929_s30 = sld [smem:[#allocation3 + $0x4]] }
  0x31   : > { %v352_v32 = vmul.f32 %v351_v30, %v868_v2  ;;  %v367_v34 = vstv %s672_s19  ;;  %v360_v35 = vmul.f32 %v359_v33, %v876_v7  ;;  %s935_s4 = sld [smem:[#allocation3 + $0x1b]]  ;;  %v375_v37 = vstv %s911_s20  ;;  %s939_s5 = sld [smem:[#allocation3 + $0x1c]] }
  0x32   : > { %298 = vrot.lane.b32.xlu0 %v296_v16, %s781_s10  ;;  %v368_v36 = vmul.f32 %v367_v34, %v883_v12  ;;  %v383_v38 = vstv %s913_s21  ;;  %s941_s6 = sld [smem:[#allocation3 + $0x5]]  ;;  %s946_s7 = sld [smem:[#allocation3 + $0x6]]  ;;  %v376_v44 = vmul.f32 %v375_v37, %v886_v14  ;;  %v391_v46 = vstv %s915_s22 }
  0x33   : > { %306 = vrot.lane.b32.xlu1 %v304_v17, %s781_s10  ;;  %v225_v42 = vstv %s917_s23  ;;  %v384_v45 = vmul.f32 %v383_v38, %v893_v18  ;;  %s953_s8 = sld [smem:[#allocation3 + $0x1d]]  ;;  %s957_s9 = sld [smem:[#allocation3 + $0x1e]]  ;;  %v392_v52 = vmul.f32 %v391_v46, %v897_v20 }
  0x34   : > { %v227_v39 = vstv %s226_s24  ;;  %v231_v40 = vstv %s651_s26  ;;  %s965_s11 = sld [smem:[#allocation3 + $0x8]]  ;;  %s973_s12 = sld [smem:[#allocation3 + $0x1f]] }
  0x35   : > { %v228_v41 = vmul.f32 %v227_v39, %v865_v1  ;;  %v235_v43 = vstv %s923_s27  ;;  %v232_v47 = vmul.f32 %v231_v40, %v871_v4  ;;  %v239_v49 = vstv %s927_s29  ;;  %s975_s13 = sld [smem:[#allocation3 + $0x20]]  ;;  %s987_s2 = sld [smem:[#allocation3 + $0x21]] }
  0x36   : > { %314 = vrot.lane.b32.xlu0 %v312_v22, %s781_s10  ;;  %v399_v48 = vstv %s925_s28  ;;  %v236_v50 = vmul.f32 %v235_v43, %v868_v2  ;;  %v243_v53 = vstv %s929_s30  ;;  %v240_v56 = vmul.f32 %v239_v49, %v876_v7  ;;  %s989_s18 = sld [smem:[#allocation3 + $0x22]]  ;;  %s783_s19 = smov 116  }
  0x37   : > { %322 = vrot.lane.b32.xlu1 %v320_v23, %s781_s10  ;;  %v229_v51 = vadd.f32 %v228_v41, %v225_v42  ;;  %v400_v54 = vmul.f32 %v399_v48, %v905_v24  ;;  %v407_v55 = vstv %s935_s4  ;;  %v415_v58 = vstv %s939_s5  ;;  %s685_s20 = sld [smem:[#allocation3 + $0x23]]  ;;  %s686_s21 = sld [smem:[#allocation3 + $0x24]] }
  0x38   : > { %v247_v59 = vstv %s941_s6  ;;  %v244_v60 = vmul.f32 %v243_v53, %v883_v12  ;;  %v408_v62 = vmul.f32 %v407_v55, %v865_v1  ;;  %v251_v63 = vstv %s946_s7  ;;  %s687_s22 = sld [smem:[#allocation3 + $0x25]]  ;;  %s688_s23 = sld [smem:[#allocation3 + $0x26]] }
  0x39   : > { %v233_v57 = vadd.f32 %v232_v47, %v229_v51  ;;  %v416_v0 = vmul.f32 %v415_v58, %v871_v4  ;;  %v423_v3 = vstv %s953_s8  ;;  %v248_v5 = vmul.f32 %v247_v59, %v886_v14  ;;  %s689_s24 = sld [smem:[#allocation3 + $0x27]]  ;;  %s691_s26 = sld [smem:[#allocation3 + $0x29]] }
  0x3a   : > { %330 = vrot.lane.b32.xlu0 %v328_v27, %s781_s10  ;;  %s960_s10 = sld [smem:[#allocation3 + $0x7]]  ;;  %v431_v8 = vstv %s957_s9  ;;  %v252_v10 = vmul.f32 %v251_v63, %v893_v18  ;;  %v424_v13 = vmul.f32 %v423_v3, %v868_v2  ;;  %v259_v15 = vstv %s965_s11  ;;  %s692_s27 = sld [smem:[#allocation3 + $0x2a]] }
  0x3b   : > { %338 = vrot.lane.b32.xlu1 %v336_v28, %s782_s25  ;;  %v237_v61 = vadd.f32 %v236_v50, %v233_v57  ;;  %v432_v16 = vmul.f32 %v431_v8, %v876_v7  ;;  %v439_v21 = vstv %s973_s12  ;;  %v447_v22 = vstv %s975_s13  ;;  %s784_s28 = smov 112   ;;  %s693_s29 = sld [smem:[#allocation3 + $0x2b]] }
  0x3c   : > { %v260_v23 = vmul.f32 %v259_v15, %v905_v24  ;;  %v440_v26 = vmul.f32 %v439_v21, %v883_v12  ;;  %v448_v27 = vmul.f32 %v447_v22, %v886_v14  ;;  %v455_v29 = vstv %s987_s2  ;;  %s694_s30 = sld [smem:[#allocation3 + $0x2c]]  ;;  %s650_s4 = sshll.u32 %s1049_s14, 2 }
  0x3d   : > { %v241_v6 = vadd.f32 %v240_v56, %v237_v61  ;;  %v463_v30 = vstv %s989_s18  ;;  %v471_v34 = vstv %s685_s20  ;;  %s214_s7 = scalar_lea.vmem %s1041_s3, %s650_s4 }
  0x3e   : > { %346 = vrot.lane.b32.xlu0 %v344_v31, %s782_s25  ;;  %v464_v33 = vmul.f32 %v463_v30, %v897_v20  ;;  %v487_v38 = vstv %s687_s22  ;;  %v495_v39 = vstv %s688_s23 }
  0x3f   : > { %354 = vrot.lane.b32.xlu1 %v352_v32, %s782_s25  ;;  %v245_v11 = vadd.f32 %v244_v60, %v241_v6  ;;  %v456_v32 = vmul.f32 %v455_v29, %v893_v18  ;;  %v488_v40 = vmul.f32 %v487_v38, %v871_v4  ;;  %v496_v41 = vmul.f32 %v495_v39, %v868_v2 }
  0x40   : > { %v255_v9 = vstv %s960_s10  ;;  %v503_v42 = vstv %s689_s24  ;;  %v527_v46 = vstv %s692_s27 }
  0x41   : > { %v256_v17 = vmul.f32 %v255_v9, %v897_v20  ;;  %v249_v19 = vadd.f32 %v248_v5, %v245_v11  ;;  %v528_v4 = vmul.f32 %v527_v46, %v893_v18  ;;  %v535_v48 = vstv %s693_s29 }
  0x42   : > { %362 = vrot.lane.b32.xlu0 %v360_v35, %s782_s25  ;;  %v479_v35 = vstv %s686_s21  ;;  %v543_v2 = vstv %s694_s30  ;;  %v536_v49 = vmul.f32 %v535_v48, %v897_v20 }
  0x43   : > { %370 = vrot.lane.b32.xlu1 %v368_v36, %s782_s25  ;;  %v253_v25 = vadd.f32 %v252_v10, %v249_v19  ;;  %v472_v36 = vmul.f32 %v471_v34, %v905_v24  ;;  %v480_v37 = vmul.f32 %v479_v35, %v865_v1  ;;  %v504_v1 = vmul.f32 %v503_v42, %v876_v7 }
  0x44   : > { %v544_v50 = vmul.f32 %v543_v2, %v905_v24 }
  0x45   : > { %v257_v28 = vadd.f32 %v256_v17, %v253_v25 }
  0x46   : > { %378 = vrot.lane.b32.xlu0 %v376_v44, %s782_s25 }
  0x47   : > { %386 = vrot.lane.b32.xlu1 %v384_v45, %s782_s25  ;;  %v261_v31 = vadd.f32 %v260_v23, %v257_v28  ;;  %v519_v45 = vstv %s691_s26 }
  0x48   : > { %v520_v47 = vmul.f32 %v519_v45, %v886_v14 }
  0x4a   : > { %394 = vrot.lane.b32.xlu0 %v392_v52, %s782_s25 }
  0x4b   : > { %402 = vrot.lane.b32.xlu1 %v400_v54, %s782_s25  ;;  %s690_s25 = sld [smem:[#allocation3 + $0x28]] }
  0x4e   : > { %410 = vrot.lane.b32.xlu0 %v408_v62, %s783_s19 }
  0x4f   : > { %418 = vrot.lane.b32.xlu1 %v416_v0, %s783_s19 }
  0x51   : > { %v511_v43 = vstv %s690_s25 }
  0x52   : > { %426 = vrot.lane.b32.xlu0 %v424_v13, %s783_s19  ;;  %v512_v44 = vmul.f32 %v511_v43, %v883_v12 }
  0x53   : > { %434 = vrot.lane.b32.xlu1 %v432_v16, %s783_s19 }
  0x56   : > { %442 = vrot.lane.b32.xlu0 %v440_v26, %s783_s19 }
  0x57   : > { %450 = vrot.lane.b32.xlu1 %v448_v27, %s783_s19 }
  0x5a   : > { %458 = vrot.lane.b32.xlu0 %v456_v32, %s783_s19 }
  0x5b   : > { %466 = vrot.lane.b32.xlu1 %v464_v33, %s783_s19 }
  0x5e   : > { %474 = vrot.lane.b32.xlu0 %v472_v36, %s783_s19 }
  0x5f   : > { %482 = vrot.lane.b32.xlu1 %v480_v37, %s784_s28 }
  0x62   : > { %490 = vrot.lane.b32.xlu0 %v488_v40, %s784_s28 }
  0x63   : > { %498 = vrot.lane.b32.xlu1 %v496_v41, %s784_s28 }
  0x66   : > { %506 = vrot.lane.b32.xlu0 %v504_v1, %s784_s28 }
  0x67   : > { %514 = vrot.lane.b32.xlu1 %v512_v44, %s784_s28 }
  0x6a   : > { %522 = vrot.lane.b32.xlu0 %v520_v47, %s784_s28 }
  0x6b   : > { %530 = vrot.lane.b32.xlu1 %v528_v4, %s784_s28 }
  0x6e   : > { %538 = vrot.lane.b32.xlu0 %v536_v49, %s784_s28 }
  0x6f   : > { %546 = vrot.lane.b32.xlu1 %v544_v50, %s784_s28 }
  0x9c   : > { %v267_v7 = vpop.permute.xlu0 %266 }
  0x9d   : > { %v283_v12 = vpop.permute.xlu1 %282  ;;  %v269_v51 = vadd.f32 %v267_v7, %v261_v31 }
  0xa0   : > { %v275_v52 = vpop.permute.xlu0 %274 }
  0xa1   : > { %v291_v53 = vpop.permute.xlu1 %290  ;;  %v277_v54 = vadd.f32 %v275_v52, %v269_v51 }
  0xa3   : > { %v285_v55 = vadd.f32 %v283_v12, %v277_v54 }
  0xa4   : > { %v299_v14 = vpop.permute.xlu0 %298 }
  0xa5   : > { %v307_v56 = vpop.permute.xlu1 %306  ;;  %v293_v18 = vadd.f32 %v291_v53, %v285_v55 }
  0xa7   : > { %v301_v57 = vadd.f32 %v299_v14, %v293_v18 }
  0xa8   : > { %v315_v58 = vpop.permute.xlu0 %314 }
  0xa9   : > { %v323_v59 = vpop.permute.xlu1 %322  ;;  %v309_v60 = vadd.f32 %v307_v56, %v301_v57 }
  0xab   : > { %v317_v61 = vadd.f32 %v315_v58, %v309_v60 }
  0xac   : > { %v331_v20 = vpop.permute.xlu0 %330 }
  0xad   : > { %v339_v62 = vpop.permute.xlu1 %338  ;;  %v325_v24 = vadd.f32 %v323_v59, %v317_v61 }
  0xaf   : > { %v333_v63 = vadd.f32 %v331_v20, %v325_v24 }
  0xb0   : > { %v347_v0 = vpop.permute.xlu0 %346 }
  0xb1   : > { %v355_v3 = vpop.permute.xlu1 %354  ;;  %v341_v5 = vadd.f32 %v339_v62, %v333_v63 }
  0xb3   : > { %v349_v6 = vadd.f32 %v347_v0, %v341_v5 }
  0xb4   : > { %v363_v8 = vpop.permute.xlu0 %362 }
  0xb5   : > { %v371_v9 = vpop.permute.xlu1 %370  ;;  %v357_v10 = vadd.f32 %v355_v3, %v349_v6 }
  0xb7   : > { %v365_v11 = vadd.f32 %v363_v8, %v357_v10 }
  0xb8   : > { %v379_v13 = vpop.permute.xlu0 %378 }
  0xb9   : > { %v387_v15 = vpop.permute.xlu1 %386  ;;  %v373_v16 = vadd.f32 %v371_v9, %v365_v11 }
  0xbb   : > { %v381_v17 = vadd.f32 %v379_v13, %v373_v16 }
  0xbc   : > { %v395_v19 = vpop.permute.xlu0 %394 }
  0xbd   : > { %v403_v21 = vpop.permute.xlu1 %402  ;;  %v389_v22 = vadd.f32 %v387_v15, %v381_v17 }
  0xbf   : > { %v397_v23 = vadd.f32 %v395_v19, %v389_v22 }
  0xc0   : > { %v411_v25 = vpop.permute.xlu0 %410 }
  0xc1   : > { %v419_v26 = vpop.permute.xlu1 %418  ;;  %v405_v27 = vadd.f32 %v403_v21, %v397_v23 }
  0xc3   : > { %v413_v28 = vadd.f32 %v411_v25, %v405_v27 }
  0xc4   : > { %v427_v29 = vpop.permute.xlu0 %426 }
  0xc5   : > { %v435_v30 = vpop.permute.xlu1 %434  ;;  %v421_v31 = vadd.f32 %v419_v26, %v413_v28 }
  0xc7   : > { %v429_v32 = vadd.f32 %v427_v29, %v421_v31 }
  0xc8   : > { %v443_v33 = vpop.permute.xlu0 %442 }
  0xc9   : > { %v451_v34 = vpop.permute.xlu1 %450  ;;  %v437_v35 = vadd.f32 %v435_v30, %v429_v32 }
  0xcb   : > { %v445_v36 = vadd.f32 %v443_v33, %v437_v35 }
  0xcc   : > { %v459_v37 = vpop.permute.xlu0 %458 }
  0xcd   : > { %v467_v38 = vpop.permute.xlu1 %466  ;;  %v453_v39 = vadd.f32 %v451_v34, %v445_v36 }
  0xcf   : > { %v461_v40 = vadd.f32 %v459_v37, %v453_v39 }
  0xd0   : > { %v475_v41 = vpop.permute.xlu0 %474 }
  0xd1   : > { %v483_v42 = vpop.permute.xlu1 %482  ;;  %v469_v43 = vadd.f32 %v467_v38, %v461_v40 }
  0xd3   : > { %v477_v1 = vadd.f32 %v475_v41, %v469_v43 }
  0xd4   : > { %v491_v44 = vpop.permute.xlu0 %490 }
  0xd5   : > { %v499_v45 = vpop.permute.xlu1 %498  ;;  %v485_v46 = vadd.f32 %v483_v42, %v477_v1 }
  0xd7   : > { %v493_v47 = vadd.f32 %v491_v44, %v485_v46 }
  0xd8   : > { %v507_v4 = vpop.permute.xlu0 %506 }
  0xd9   : > { %v515_v48 = vpop.permute.xlu1 %514  ;;  %v501_v2 = vadd.f32 %v499_v45, %v493_v47 }
  0xdb   : > { %v509_v49 = vadd.f32 %v507_v4, %v501_v2 }
  0xdc   : > { %v523_v50 = vpop.permute.xlu0 %522 }
  0xdd   : > { %v531_v7 = vpop.permute.xlu1 %530  ;;  %v517_v12 = vadd.f32 %v515_v48, %v509_v49 }
  0xdf   : > { %v525_v51 = vadd.f32 %v523_v50, %v517_v12 }
  0xe0   : > { %v539_v52 = vpop.permute.xlu0 %538 }
  0xe1   : > { %v533_v53 = vadd.f32 %v531_v7, %v525_v51  ;;  %v547_v54 = vpop.permute.xlu1 %546 }
  0xe3   : > { %v541_v55 = vadd.f32 %v539_v52, %v533_v53 }
  0xe5   : > { %v549_v14 = vadd.f32 %v547_v54, %v541_v55 }
  0xe7   : > { %551 = vst.msk [vmem:[%s214_s7] sm:$0x7] %vm550_vm0, %v549_v14 }
  0xe8 PF: > { %s15_s16 = sadd.s32 1, %s778_s16   ;;  %s1044_s14 = smov %s774_s15 }
  0xe9   : > { %p12_p2 = scmp.ge.s32.totalorder %s15_s16, 4   ;;  %s1045_s15 = smov %s1047_s17 }
  0xeb   :  { %14 = sbr.rel (!%p12_p2) target bundleno = 4 (0x4), region = 67 }
  0xf2   :  { %577 = vsyncpa [#allocation4], 1 }
  0xf3   :  { %579 = vsyncpa [#allocation4 + $0x1], 1 }

</bundles_post_ra>
